<compile_context>
chip_gen: v5e
topology: v5e:2x2
jax: 0.10.0
libtpu: 0.0.40
codegen_flags: <defaults>
</compile_context>

<pallas_src>
from typing import NamedTuple

import jax
import jax.numpy as jnp
from jax.experimental import pallas as pl
from jax.experimental.pallas import tpu as pltpu

_MIB = 1024 * 1024


def _round_up(x, m):
    return ((x + m - 1) // m) * m


def _pick_th(h_pad, desired):
    """Largest multiple of 128 that divides h_pad and is <= desired (>=128)."""
    units = h_pad // 128
    d = max(1, min(units, desired // 128))
    while units % d != 0:
        d -= 1
    return d * 128


def _vmem_capacity_bytes():
    """Physical VMEM per TensorCore; conservative fallback if query fails."""
    try:
        info = pltpu.get_tpu_info()
        for attr in ("vmem_capacity_bytes", "vmem_bytes", "vmem_capacity"):
            v = getattr(info, attr, None)
            if v:
                return int(v)
    except Exception:
        pass
    return 64 * _MIB  # v7x-safe default


def _working_set_bytes(tm, th, ne_pad, in_sz, out_sz, use_scratch):
    ws = 2 * tm * ne_pad * in_sz          # x tile (double buffered)
    ws += 2 * ne_pad * th * in_sz         # W1 chunk
    ws += 2 * th * ne_pad * in_sz         # W2 chunk
    ws += 2 * 8 * th * 4                  # b1 chunk (f32, sublane padded)
    ws += 2 * 8 * ne_pad * 4              # b2 (f32)
    ws += 2 * tm * ne_pad * out_sz        # output tile
    if use_scratch:
        ws += tm * ne_pad * 4             # f32 accumulator
    return ws


# --------------------------------------------------------------------------
# Kernels
# --------------------------------------------------------------------------
def ffn_kernel_f32_out(x_ref, w1_ref, b1_ref, w2_ref, b2_ref, o_ref):
    """f32 output: accumulate directly into the resident output block
    (saves a tm*ne_pad*4 VMEM scratch and the finalize copy)."""
    k = pl.program_id(1)

    @pl.when(k == 0)
    def _init():
        o_ref[...] = jnp.zeros_like(o_ref)

    h = jnp.dot(x_ref[...], w1_ref[...], preferred_element_type=jnp.float32)
    h = jnp.maximum(h + b1_ref[...], 0.0)                 # bias + ReLU (VPU)
    o_ref[...] += jnp.dot(h.astype(w2_ref.dtype), w2_ref[...],
                          preferred_element_type=jnp.float32)

    @pl.when(k == pl.num_programs(1) - 1)
    def _finalize():
        o_ref[...] += b2_ref[...]


def ffn_kernel_acc(x_ref, w1_ref, b1_ref, w2_ref, b2_ref, o_ref, acc_ref):
    """Narrow (e.g. bf16) output: f32 VMEM accumulator, single cast + store."""
    k = pl.program_id(1)

    @pl.when(k == 0)
    def _init():
        acc_ref[...] = jnp.zeros_like(acc_ref)

    h = jnp.dot(x_ref[...], w1_ref[...], preferred_element_type=jnp.float32)
    h = jnp.maximum(h + b1_ref[...], 0.0)
    acc_ref[...] += jnp.dot(h.astype(w2_ref.dtype), w2_ref[...],
                            preferred_element_type=jnp.float32)

    @pl.when(k == pl.num_programs(1) - 1)
    def _finalize():
        o_ref[...] = (acc_ref[...] + b2_ref[...]).astype(o_ref.dtype)


# --------------------------------------------------------------------------
# Parameter preparation (hoisted out of the per-call hot path)
# --------------------------------------------------------------------------
class FFNParams(NamedTuple):
    w1: jax.Array     # (ne_pad, h_pad)  compute dtype
    b1: jax.Array     # (1, h_pad)       f32
    w2: jax.Array     # (h_pad, ne_pad)  compute dtype
    b2: jax.Array     # (1, ne_pad)      f32
    n_embd: int
    hidden: int


def prepare_params(w1, b1, w2, b2, compute_dtype=jnp.bfloat16):
    """Pad feature dims to multiples of 128 and cast weights ONCE.

    compute_dtype=bf16 (default) halves weight streaming and uses the
    MXU-native path; accumulation stays f32 inside the kernel.  Use f32 only
    when exact-precision checks are required."""
    n_embd, hidden = w1.shape
    assert w2.shape == (hidden, n_embd)
    ne_pad = _round_up(n_embd, 128)
    h_pad = _round_up(hidden, 128)

    def pad2(a, rows, cols):
        pr, pc = rows - a.shape[0], cols - a.shape[1]
        return a if (pr == 0 and pc == 0) else jnp.pad(a, ((0, pr), (0, pc)))

    w1p = pad2(w1.astype(compute_dtype), ne_pad, h_pad)
    w2p = pad2(w2.astype(compute_dtype), h_pad, ne_pad)
    b1p = pad2(b1.astype(jnp.float32).reshape(1, hidden), 1, h_pad)
    b2p = pad2(b2.astype(jnp.float32).reshape(1, n_embd), 1, ne_pad)
    return FFNParams(w1p, b1p, w2p, b2p, n_embd, hidden)


# --------------------------------------------------------------------------
# Forward pass
# --------------------------------------------------------------------------
def feed_forward(x, params: FFNParams, *, tm=None, th=None, out_dtype=None,
                 vmem_limit_bytes=None):
    """x: (B, T, n_embd) -> (B, T, n_embd).  Dropout = eval-mode identity."""
    B, T, n_embd = x.shape
    assert n_embd == params.n_embd
    M = B * T
    ne_pad = params.w2.shape[1]
    h_pad = params.w1.shape[1]
    cdt = params.w1.dtype
    out_dtype = x.dtype if out_dtype is None else out_dtype

    # Per-generation defaults keyed off physical VMEM.
    cap = _vmem_capacity_bytes()
    big_vmem = cap >= 96 * _MIB          # v5e/v6e: 128 MiB; v7x: 64 MiB/TC
    if vmem_limit_bytes is None:
        vmem_limit_bytes = (100 * _MIB) if big_vmem else (48 * _MIB)
    if tm is None:
        tm = 512 if big_vmem else 256    # bigger tm => less weight re-streaming
    if th is None:
        th = 2048 if big_vmem else 1024
    num_tc = 1 if big_vmem else 2        # heuristic: 64 MiB/TC => 2 TCs (v7x)

    tm = max(8, min(_round_up(tm, 8), _round_up(M, 8)))
    th = _pick_th(h_pad, th)
    m_pad = _round_up(M, tm)

    # Ensure >= 2 blocks on the 'parallel' token axis so both TensorCores get
    # work on 2-TC chips (no effect on v5e/v6e).
    if num_tc == 2 and m_pad // tm < 2 and tm >= 16:
        tm = _round_up(tm // 2, 8)
        m_pad = _round_up(M, tm)

    use_scratch = out_dtype != jnp.float32
    in_sz = jnp.dtype(cdt).itemsize
    out_sz = jnp.dtype(out_dtype).itemsize

    # Shrink tiles until the double-buffered working set fits the budget,
    # leaving the compiler headroom for internal scratch.
    budget = int(0.85 * vmem_limit_bytes)
    for _ in range(16):
        if _working_set_bytes(tm, th, ne_pad, in_sz, out_sz, use_scratch) <= budget:
            break
        if th > 128:
            th = _pick_th(h_pad, max(128, th // 2))
        elif tm > 8:
            tm = max(8, _round_up(tm // 2, 8))
            m_pad = _round_up(M, tm)
        else:
            break

    # Only x gets reshaped/padded/cast per call (weights were prepared once).
    x2d = x.reshape(M, n_embd).astype(cdt)
    pr, pc = m_pad - M, ne_pad - n_embd
    if pr or pc:
        x2d = jnp.pad(x2d, ((0, pr), (0, pc)))

    grid = (m_pad // tm, h_pad // th)    # (token tiles: parallel, hidden: reduction)
    kernel = ffn_kernel_acc if use_scratch else ffn_kernel_f32_out
    scratch = ((pltpu.VMEM((tm, ne_pad), jnp.float32),) if use_scratch else ())

    out2d = pl.pallas_call(
        kernel,
        out_shape=jax.ShapeDtypeStruct((m_pad, ne_pad), out_dtype),
        grid_spec=pltpu.PrefetchScalarGridSpec(
            num_scalar_prefetch=0,
            grid=grid,
            in_specs=[
                pl.BlockSpec((tm, ne_pad), lambda i, k: (i, 0)),   # x tile (resident)
                pl.BlockSpec((ne_pad, th), lambda i, k: (0, k)),   # W1 chunk
                pl.BlockSpec((1, th),      lambda i, k: (0, k)),   # b1 chunk
                pl.BlockSpec((th, ne_pad), lambda i, k: (k, 0)),   # W2 chunk
                pl.BlockSpec((1, ne_pad),  lambda i, k: (0, 0)),   # b2 (constant)
            ],
            out_specs=pl.BlockSpec((tm, ne_pad), lambda i, k: (i, 0)),
            scratch_shapes=scratch,
        ),
        compiler_params=pltpu.CompilerParams(
            dimension_semantics=("parallel", "arbitrary"),
            vmem_limit_bytes=vmem_limit_bytes,
        ),
    )(x2d, params.w1, params.b1, params.w2, params.b2)

    return out2d[:M, :n_embd].reshape(B, T, n_embd)


def feed_forward_raw(x, w1, b1, w2, b2, *, compute_dtype=jnp.bfloat16, **kwargs):
    """One-shot convenience wrapper.  For repeated calls, call prepare_params
    once and reuse the result (avoids re-padding/re-casting the weights)."""
    return feed_forward(x, prepare_params(w1, b1, w2, b2, compute_dtype), **kwargs)


# --------------------------------------------------------------------------
# Demo / correctness checks
# --------------------------------------------------------------------------
def init_params(key, n_embd, dtype=jnp.float32):
    """Deterministic init mimicking PyTorch nn.Linear defaults
    (uniform(-1/sqrt(fan_in), 1/sqrt(fan_in))); weights stored (in, out)."""
    hidden = 4 * n_embd
    k1, k2, k3, k4 = jax.random.split(key, 4)
    bound1 = 1.0 / jnp.sqrt(n_embd)
    bound2 = 1.0 / jnp.sqrt(hidden)
    w1 = jax.random.uniform(k1, (n_embd, hidden), dtype, -bound1, bound1)
    b1 = jax.random.uniform(k2, (hidden,), dtype, -bound1, bound1)
    w2 = jax.random.uniform(k3, (hidden, n_embd), dtype, -bound2, bound2)
    b2 = jax.random.uniform(k4, (n_embd,), dtype, -bound2, bound2)
    return w1, b1, w2, b2


def _reference(x, w1, b1, w2, b2):
    # Eval-mode dropout == identity.
    return jnp.maximum(x @ w1 + b1, 0.0) @ w2 + b2


def _reference_bf16(x, w1, b1, w2, b2):
    """Reference that mirrors the kernel's bf16 rounding points."""
    f32 = jnp.float32
    xb = x.astype(jnp.bfloat16).astype(f32)
    w1b = w1.astype(jnp.bfloat16).astype(f32)
    w2b = w2.astype(jnp.bfloat16).astype(f32)
    h = jnp.maximum(xb @ w1b + b1.astype(f32), 0.0)
    h = h.astype(jnp.bfloat16).astype(f32)
    return h @ w2b + b2.astype(f32)


if __name__ == "__main__":
    key = jax.random.PRNGKey(0)

    # Case 1: tiny shapes (feature padding 32 -> 128, small grid), exact f32 path.
    B, T, n_embd = 2, 8, 32                      # hidden = 128
    kx, kp, key = jax.random.split(key, 3)
    x = jax.random.normal(kx, (B, T, n_embd), dtype=jnp.float32)
    w1, b1, w2, b2 = init_params(kp, n_embd)
    params_f32 = prepare_params(w1, b1, w2, b2, compute_dtype=jnp.float32)

    out = jax.block_until_ready(feed_forward(x, params_f32))
    ref = _reference(x, w1, b1, w2, b2)
    assert out.shape == (B, T, n_embd)
    assert jnp.allclose(out, ref, atol=2e-5, rtol=2e-5)

    # Case 2: ragged shapes + multi-step hidden reduction (small tiles are for
    # grid-logic testing only; production uses the larger auto defaults).
    B2, T2, n_embd2 = 2, 24, 96                  # M = 48, hidden = 384
    kx2, kp2 = jax.random.split(key)
    x2 = jax.random.normal(kx2, (B2, T2, n_embd2), dtype=jnp.float32)
    w1b, b1b, w2b, b2b = init_params(kp2, n_embd2)
    params2_f32 = prepare_params(w1b, b1b, w2b, b2b, compute_dtype=jnp.float32)

    out2 = jax.block_until_ready(feed_forward(x2, params2_f32, tm=32, th=128))
    ref2 = _reference(x2, w1b, b1b, w2b, b2b)
    assert out2.shape == (B2, T2, n_embd2)
    assert jnp.allclose(out2, ref2, atol=2e-5, rtol=2e-5)

    # Case 3: default bf16 compute path (production config) + bf16 output
    # (exercises the f32-scratch accumulator kernel). Looser tolerance vs a
    # bf16-rounding-aware reference.
    params2_bf16 = prepare_params(w1b, b1b, w2b, b2b)          # bf16 default
    x2_bf16 = x2.astype(jnp.bfloat16)
    out3 = jax.block_until_ready(feed_forward(x2_bf16, params2_bf16))
    ref3 = _reference_bf16(x2, w1b, b1b, w2b, b2b)
    assert out3.dtype == jnp.bfloat16
    assert jnp.allclose(out3.astype(jnp.float32), ref3, atol=5e-2, rtol=5e-2)

    print("KERNEL_OK")
</pallas_src>

<mosaic_0001>
module attributes {stable_mosaic.version = 11 : i64} {
  func.func @ffn_kernel_f32_out(%arg0: i32, %arg1: i32, %arg2: memref<8x128xf32, #tpu.memory_space<vmem>>, %arg3: memref<128x128xf32, #tpu.memory_space<vmem>>, %arg4: memref<1x128xf32, #tpu.memory_space<vmem>>, %arg5: memref<128x128xf32, #tpu.memory_space<vmem>>, %arg6: memref<1x128xf32, #tpu.memory_space<vmem>>, %arg7: memref<8x128xf32, #tpu.memory_space<vmem>>) attributes {dimension_semantics = [#tpu.dimension_semantics<parallel>, #tpu.dimension_semantics<arbitrary>], iteration_bounds = array<i64: 2, 1>, scalar_prefetch = 0 : i64, scratch_operands = 0 : i64, tpu.core_type = #tpu.core_type<tc>, window_params = [{transform_indices = @transform_0, window_bounds = array<i64: 8, 128>}, {transform_indices = @transform_1, window_bounds = array<i64: 128, 128>}, {transform_indices = @transform_2, window_bounds = array<i64: 1, 128>}, {transform_indices = @transform_3, window_bounds = array<i64: 128, 128>}, {pipeline_mode = #tpu.pipeline_mode<synchronous>, transform_indices = @transform_4, window_bounds = array<i64: 1, 128>}, {transform_indices = @transform_5, window_bounds = array<i64: 8, 128>}]} {
    %c0_i32 = arith.constant 0 : i32
    %0 = arith.cmpi eq, %arg1, %c0_i32 : i32
    %1 = arith.extui %0 : i1 to i32
    %c0_i32_0 = arith.constant 0 : i32
    %2 = arith.cmpi ne, %1, %c0_i32_0 : i32
    scf.if %2 {
      %cst_16 = arith.constant 0.000000e+00 : f32
      %19 = vector.broadcast %cst_16 : f32 to vector<8x128xf32>
      %c0_17 = arith.constant 0 : index
      %c0_18 = arith.constant 0 : index
      %20 = vector.load %arg7[%c0_17, %c0_18] : memref<8x128xf32, #tpu.memory_space<vmem>>, vector<8x128xf32>
      tpu.vector_store %arg7[%c0_17, %c0_18], %19 {strides = array<i32>} : memref<8x128xf32, #tpu.memory_space<vmem>>, vector<8x128xf32>,
    } else {
    }
    %c0 = arith.constant 0 : index
    %c0_1 = arith.constant 0 : index
    %3 = vector.load %arg2[%c0, %c0_1] : memref<8x128xf32, #tpu.memory_space<vmem>>, vector<8x128xf32>
    %c0_2 = arith.constant 0 : index
    %c0_3 = arith.constant 0 : index
    %4 = vector.load %arg3[%c0_2, %c0_3] : memref<128x128xf32, #tpu.memory_space<vmem>>, vector<128x128xf32>
    %cst = arith.constant dense<0.000000e+00> : vector<8x128xf32>
    %5 = tpu.matmul %3, %4, %cst {dimension_numbers = #tpu.dot_dimension_numbers<[1], [0], [0], [1], [0, 0, 1, 1], [], []>} : vector<8x128xf32>, vector<128x128xf32>, vector<8x128xf32> -> vector<8x128xf32>
    %c0_4 = arith.constant 0 : index
    %c0_5 = arith.constant 0 : index
    %6 = vector.load %arg4[%c0_4, %c0_5] : memref<1x128xf32, #tpu.memory_space<vmem>>, vector<1x128xf32>
    %7 = vector.broadcast %6 : vector<1x128xf32> to vector<8x128xf32>
    %8 = arith.addf %5, %7 : vector<8x128xf32>
    %cst_6 = arith.constant 0.000000e+00 : f32
    %9 = vector.broadcast %cst_6 : f32 to vector<8x128xf32>
    %10 = arith.maximumf %8, %9 : vector<8x128xf32>
    %c0_7 = arith.constant 0 : index
    %c0_8 = arith.constant 0 : index
    %11 = vector.load %arg7[%c0_7, %c0_8] : memref<8x128xf32, #tpu.memory_space<vmem>>, vector<8x128xf32>
    %c0_9 = arith.constant 0 : index
    %c0_10 = arith.constant 0 : index
    %12 = vector.load %arg5[%c0_9, %c0_10] : memref<128x128xf32, #tpu.memory_space<vmem>>, vector<128x128xf32>
    %cst_11 = arith.constant dense<0.000000e+00> : vector<8x128xf32>
    %13 = tpu.matmul %10, %12, %cst_11 {dimension_numbers = #tpu.dot_dimension_numbers<[1], [0], [0], [1], [0, 0, 1, 1], [], []>} : vector<8x128xf32>, vector<128x128xf32>, vector<8x128xf32> -> vector<8x128xf32>
    %14 = arith.addf %11, %13 : vector<8x128xf32>
    %c0_12 = arith.constant 0 : index
    %c0_13 = arith.constant 0 : index
    %15 = vector.load %arg7[%c0_12, %c0_13] : memref<8x128xf32, #tpu.memory_space<vmem>>, vector<8x128xf32>
    tpu.vector_store %arg7[%c0_12, %c0_13], %14 {strides = array<i32>} : memref<8x128xf32, #tpu.memory_space<vmem>>, vector<8x128xf32>,
    %c0_i32_14 = arith.constant 0 : i32
    %16 = arith.cmpi eq, %arg1, %c0_i32_14 : i32
    %17 = arith.extui %16 : i1 to i32
    %c0_i32_15 = arith.constant 0 : i32
    %18 = arith.cmpi ne, %17, %c0_i32_15 : i32
    scf.if %18 {
      %c0_16 = arith.constant 0 : index
      %c0_17 = arith.constant 0 : index
      %19 = vector.load %arg7[%c0_16, %c0_17] : memref<8x128xf32, #tpu.memory_space<vmem>>, vector<8x128xf32>
      %c0_18 = arith.constant 0 : index
      %c0_19 = arith.constant 0 : index
      %20 = vector.load %arg6[%c0_18, %c0_19] : memref<1x128xf32, #tpu.memory_space<vmem>>, vector<1x128xf32>
      %21 = vector.broadcast %20 : vector<1x128xf32> to vector<8x128xf32>
      %22 = arith.addf %19, %21 : vector<8x128xf32>
      %c0_20 = arith.constant 0 : index
      %c0_21 = arith.constant 0 : index
      %23 = vector.load %arg7[%c0_20, %c0_21] : memref<8x128xf32, #tpu.memory_space<vmem>>, vector<8x128xf32>
      tpu.vector_store %arg7[%c0_20, %c0_21], %22 {strides = array<i32>} : memref<8x128xf32, #tpu.memory_space<vmem>>, vector<8x128xf32>,
    } else {
    }
    return
  }
  func.func @transform_0(%arg0: i32, %arg1: i32) -> (i32, i32) {
    %c0_i32 = arith.constant 0 : i32
    %c0_i32_0 = arith.constant 0 : i32
    return %arg0, %c0_i32 : i32, i32
  }
  func.func @transform_1(%arg0: i32, %arg1: i32) -> (i32, i32) {
    %c0_i32 = arith.constant 0 : i32
    %c0_i32_0 = arith.constant 0 : i32
    return %c0_i32, %arg1 : i32, i32
  }
  func.func @transform_2(%arg0: i32, %arg1: i32) -> (i32, i32) {
    %c0_i32 = arith.constant 0 : i32
    %c0_i32_0 = arith.constant 0 : i32
    return %c0_i32, %arg1 : i32, i32
  }
  func.func @transform_3(%arg0: i32, %arg1: i32) -> (i32, i32) {
    %c0_i32 = arith.constant 0 : i32
    %c0_i32_0 = arith.constant 0 : i32
    return %arg1, %c0_i32 : i32, i32
  }
  func.func @transform_4(%arg0: i32, %arg1: i32) -> (i32, i32) {
    %c0_i32 = arith.constant 0 : i32
    %c0_i32_0 = arith.constant 0 : i32
    %c0_i32_1 = arith.constant 0 : i32
    return %c0_i32, %c0_i32_0 : i32, i32
  }
  func.func @transform_5(%arg0: i32, %arg1: i32) -> (i32, i32) {
    %c0_i32 = arith.constant 0 : i32
    %c0_i32_0 = arith.constant 0 : i32
    return %arg0, %c0_i32 : i32, i32
  }
}

</mosaic_0001>

<bundles_post_ra>
// kernel: tpu_custom_call.1
= control target key start
LH: loop header
LB: loop body
LE: loop exit
PB: predicated region body
PF: predicated region fallthrough
CT: control target
= control target key end

     0   :  { %10 = vsyncpa [#allocation3], 0  ;;  %s1017_s0 = inlined_call_operand.hbm [shape: f32[16,128], index: 0, kind: input, shape index: {}]   ;;  %s1018_s1 = inlined_call_operand.hbm [shape: f32[128,128], index: 1, kind: input, shape index: {}]   ;;  %s1019_s2 = inlined_call_operand.vmem [shape: f32[1,128], index: 2, kind: input, shape index: {}]   ;;  %s1020_s3 = inlined_call_operand.hbm [shape: f32[128,128], index: 3, kind: input, shape index: {}]   ;;  %s1021_s4 = inlined_call_operand.vmem [shape: f32[1,128], index: 4, kind: input, shape index: {}]   ;;  %s1022_s5 = inlined_call_operand.hbm [shape: f32[16,128], index: 5, kind: output, shape index: {}]  }
   0x1   :  { %12 = vsyncpa [#allocation3 + $0x1], 0 }
   0x2   :  { %13 = vsyncpa [#allocation6], 0 }
   0x3   :  { %14 = vsyncpa [#allocation4], 0 }
   0x4   :  { %16 = vsyncpa [#allocation4 + $0x1], 0  ;;  %s860_s18 = smov 0   ;;  %s862_s19 = smov 0  }
   0x5   :  { %s864_s20 = smov 0   ;;  %s866_s21 = smov 0  }
   0x6   :  { %s868_s22 = smov 0   ;;  %s870_s23 = smov 0  }
   0x7 LB: > { %s542_s24 = sadd.s32 4294967295, %s824_s23   ;;  %p544_p0 = scmp.ge.s32.totalorder %s824_s23, 1  ;;  %s824_s23 = sphi %s870_s23, %s22_s23   ;;  %s820_s22 = sphi %s868_s22, %s1032_s22   ;;  %s816_s21 = sphi %s866_s21, %s1031_s21   ;;  %s812_s20 = sphi %s864_s20, %s1030_s20   ;;  %s808_s19 = sphi %s862_s19, %s1029_s19   ;;  %s804_s18 = sphi %s860_s18, %s1028_s18  }
   0x8   : > { %p894_p1 = scmp.eq.s32.totalorder %s542_s24, 0  ;;  %p190_p2 = scmp.lt.s32.totalorder %s824_s23, 3 }
   0x9   : > { %s203_s28 = sshll.u32 %s1018_s1, 4  ;;  %s826_s30 = smov [#allocation5]   ;;  %s204_s28 = int_to_ptr.hbm [resolvable:$true] %s203_s28 }
   0xa   : > { %p902_p3 = pnand %p544_p0, %p190_p2  ;;  %s205_s6 = sshll.u32 %s826_s30, 4  ;;  %s206_s6 = int_to_ptr.vmem [resolvable:$true] %s205_s6 }
   0xb   : > { %p548_p6 = scmp.ge.s32.totalorder %s824_s23, 2  ;;  %s226_s9 = sshll.u32 %s1020_s3, 4  ;;  %s227_s9 = int_to_ptr.hbm [resolvable:$true] %s226_s9 }
   0xc   : > { %p572_p4 = pneg %p902_p3  ;;  %s827_s10 = smov 128  }
   0xd   : > { %s828_s11 = smov 8   ;;  %s829_s12 = smov [#allocation7]  }
   0xe   : > { %p573_p5 = pnand %p572_p4, %p894_p1  ;;  %s228_s13 = sshll.u32 %s829_s12, 4  ;;  %s229_s13 = int_to_ptr.vmem [resolvable:$true] %s228_s13 }
   0xf   : > { %s34_s14 = sadd.s32 1, %s820_s22  ;;  %s543_s15 = sadd.s32 4294967294, %s824_s23  }
  0x10   : > { %575 = dma.hbm_to_vmem [thread:$0]  (!%p573_p5), %s204_s28, 2048, %s206_s6, [#allocation6], %s827_s10, %s827_s10, %s828_s11  }
  0x11   : > { %578 = dma.hbm_to_vmem [thread:$0]  (!%p573_p5), %s227_s9, 2048, %s229_s13, [#allocation6], %s827_s10, %s827_s10, %s828_s11  }
  0x12   : > { %p36_p7 = scmp.ge.s32.totalorder %s34_s14, 2  ;;  %s41_s16 = sadd.s32 1, %s812_s20 }
  0x13   : > { %p48_p8 = scmp.ne.s32.totalorder %s812_s20, %s808_s19  ;;  %p49_p9 = scmp.eq.s32.totalorder %s824_s23, 0 }
  0x14   : > { %s1034_s14 = smov (%p36_p7, %s34_s14), 0  ;;  %p54_p10 = scmp.ne.s32.totalorder %s808_s19, %s804_s18 }
  0x15   : > { %s38_s17 = ssub.s32 %s820_s22, %s1034_s14  ;;  %p177_p11 = scmp.eq.s32.totalorder %s542_s24, 1 }
  0x16   : > { %p39_p12 = scmp.eq.s32.totalorder %s38_s17, 0  ;;  %p930_p13 = por %p894_p1, %p54_p10 }
  0x17   : > { %p934_p0 = por %p177_p11, %p48_p8  ;;  %p183_p2 = scmp.eq.s32.totalorder %s543_s15, 1 }
  0x18   : > { %s939_s28 = scalar_select %p39_p12, %s812_s20, %s41_s16  }
  0x19   : > { %p50_p4 = por %p49_p9, %p48_p8  ;;  %p941_p5 = por %p183_p2, %p54_p10 }
  0x1a   : > { %s245_s6 = sand.u32 1, %s812_s20   ;;  %s550_s24 = sshll.u32 %s820_s22, 3 }
  0x1b   : > { %p589_p7 = scmp.lt.s32.totalorder %s824_s23, 2  ;;  %s549_s7 = sshll.u32 %s245_s6, 3 }
  0x1c   : > { %s253_s10 = scalar_lea.hbm %s1017_s0, %s550_s24  ;;  %s249_s12 = scalar_lea.vmem [#allocation2], %s549_s7 }
  0x1d   : > { %s255_s11 = sshll.u32 %s253_s10, 4  ;;  %s257_s13 = sshll.u32 %s249_s12, 4  ;;  %s256_s11 = int_to_ptr.hbm [resolvable:$true] %s255_s11  ;;  %s258_s13 = int_to_ptr.vmem [resolvable:$true] %s257_s13 }
  0x1e   : > { %p580_p11 = pnand %p589_p7, %p50_p4  ;;  %s246_s15 = scalar_lea.sflag [#allocation3], %s245_s6 }
  0x1f   : > { %266 = sbr.rel (%p902_p3) target bundleno = 332 (0x14c), region = 40  ;;  %s954_s16 = sand.u32 (!%p902_p3), 1, %s808_s19  }
  0x20   : > { %582 = dma.hbm_to_vmem [thread:$0]  (!%p580_p11), %s256_s11, 128, %s258_s13, %s246_s15  }
  0x21   : > { %s552_s17 = sshll.u32 (!%p902_p3), %s954_s16, 3  ;;  %s269_s24 = scalar_lea.sflag (!%p902_p3), [#allocation3], %s954_s16 }
  0x22   : > { %s960_s7 = scalar_lea.vmem (!%p902_p3), [#allocation2], %s552_s17 }
  0x24   : > { %791 = dma.done.wait (%p930_p13), %s269_s24, 128  }
  0x25   : > { %793 = vsyncadd (%p930_p13), %s269_s24, 4294967168 }
  0x26   : > { %795 = dma.done.wait (%p894_p1), [#allocation6], 4096  }
  0x27   : > { %797 = vsyncadd (%p894_p1), [#allocation6], 4294963200  ;;  %v338_v0 = vld [vmem:[#allocation5 + $0x78] sm:$0xff]  ;;  %v337_v1 = vld [vmem:[#allocation5 + $0x70] sm:$0xff]  ;;  %s557_s26 = sshll.u32 %s816_s21, 3  ;;  %s312_s12 = scalar_lea.vmem [#allocation8], %s552_s17 }
  0x28   : > { %343 = vmatpush.msra.mxu0 %v338_v0  ;;  %v336_v2 = vld [vmem:[#allocation5 + $0x68] sm:$0xff]  ;;  %v335_v3 = vld [vmem:[#allocation5 + $0x60] sm:$0xff]  ;;  %v380_v4 = vld [vmem:[#allocation7 + $0x78] sm:$0xff]  ;;  %s424_s9 = scalar_lea.hbm %s1022_s5, %s557_s26  ;;  %s426_s13 = sshll.u32 %s312_s12, 4  ;;  %s427_s13 = int_to_ptr.vmem [resolvable:$true] %s426_s13 }
  0x29   : > { %v334_v5 = vld [vmem:[#allocation5 + $0x58] sm:$0xff]  ;;  %381 = vmatpush.msra.mxu1 %v380_v4  ;;  %v379_v6 = vld [vmem:[#allocation7 + $0x70] sm:$0xff]  ;;  %v378_v7 = vld [vmem:[#allocation7 + $0x68] sm:$0xff]  ;;  %s428_s15 = sshll.u32 %s424_s9, 4  ;;  %s414_s24 = scalar_lea.sflag [#allocation4], %s954_s16  ;;  %s429_s15 = int_to_ptr.hbm [resolvable:$true] %s428_s15 }
  0x2a   : > { %344 = vmatpush.msra.mxu0 %v337_v1  ;;  %v333_v8 = vld [vmem:[#allocation5 + $0x50] sm:$0xff]  ;;  %v377_v9 = vld [vmem:[#allocation7 + $0x60] sm:$0xff]  ;;  %v332_v10 = vld [vmem:[#allocation5 + $0x48] sm:$0xff]  ;;  %s752_s21 = sshra.s32 %s429_s15, 4  ;;  %s758_s26 = scalar_lea.hbm %s1022_s5, 16  ;;  %s753_s21 = int_to_ptr.hbm [resolvable:$true] %s752_s21 }
  0x2b   : > { %382 = vmatpush.msra.mxu1 %v379_v6  ;;  %v376_v11 = vld [vmem:[#allocation7 + $0x58] sm:$0xff]  ;;  %v331_v12 = vld [vmem:[#allocation5 + $0x40] sm:$0xff]  ;;  %v375_v13 = vld [vmem:[#allocation7 + $0x50] sm:$0xff]  ;;  %p759_p9 = scmp.lt.s32.totalorder %s753_s21, %s1022_s5 }
  0x2c   : > { %345 = vmatpush.msra.mxu0 %v336_v2  ;;  %v330_v14 = vld [vmem:[#allocation5 + $0x38] sm:$0xff]  ;;  %v374_v15 = vld [vmem:[#allocation7 + $0x48] sm:$0xff]  ;;  %v329_v16 = vld [vmem:[#allocation5 + $0x30] sm:$0xff] }
  0x2d   : > { %383 = vmatpush.msra.mxu1 %v378_v7  ;;  %v373_v17 = vld [vmem:[#allocation7 + $0x40] sm:$0xff]  ;;  %v328_v18 = vld [vmem:[#allocation5 + $0x28] sm:$0xff]  ;;  %v372_v19 = vld [vmem:[#allocation7 + $0x38] sm:$0xff] }
  0x2e   : > { %346 = vmatpush.msra.mxu0 %v335_v3  ;;  %v327_v20 = vld [vmem:[#allocation5 + $0x20] sm:$0xff]  ;;  %v371_v21 = vld [vmem:[#allocation7 + $0x30] sm:$0xff]  ;;  %v326_v22 = vld [vmem:[#allocation5 + $0x18] sm:$0xff] }
  0x2f   : > { %384 = vmatpush.msra.mxu1 %v377_v9  ;;  %v370_v23 = vld [vmem:[#allocation7 + $0x28] sm:$0xff]  ;;  %v325_v24 = vld [vmem:[#allocation5 + $0x10] sm:$0xff]  ;;  %v369_v25 = vld [vmem:[#allocation7 + $0x20] sm:$0xff] }
  0x30   : > { %347 = vmatpush.msra.mxu0 %v334_v5  ;;  %v324_v26 = vld [vmem:[#allocation5 + $0x8] sm:$0xff]  ;;  %v368_v27 = vld [vmem:[#allocation7 + $0x18] sm:$0xff]  ;;  %v323_v28 = vld [vmem:[#allocation5] sm:$0xff] }
  0x31   : > { %385 = vmatpush.msra.mxu1 %v376_v11  ;;  %v322_v29 = vld [vmem:[%s960_s7] sm:$0xff]  ;;  %v366_v31 = vld [vmem:[#allocation7 + $0x8] sm:$0xff]  ;;  %v365_v32 = vld [vmem:[#allocation7] sm:$0xff]  ;;  %s754_s7 = scalar_lea.hbm %s753_s21, 8 }
  0x32   : > { %348 = vmatpush.msra.mxu0 %v333_v8  ;;  %v367_v30 = vld [vmem:[#allocation7 + $0x10] sm:$0xff]  ;;  %p755_p1 = scmp.ne.s32.totalorder %s753_s21, %s754_s7  ;;  %p760_p10 = scmp.lt.s32.totalorder %s758_s26, %s754_s7 }
  0x33   : > { %386 = vmatpush.msra.mxu1 %v375_v13  ;;  %v646_v33 = vld [vmem:[%s1019_s2] ss:$0 sm:$0xff] }
  0x34   : > { %349 = vmatpush.msra.mxu0 %v332_v10  ;;  %v647_v37 = vld [vmem:[%s1021_s4] ss:$0 sm:$0xff]  ;;  %p756_p3 = pnand %p755_p1, %p934_p0  ;;  %p761_p12 = por %p760_p10, %p759_p9 }
  0x35   : > { %387 = vmatpush.msra.mxu1 %v374_v15 }
  0x36   : > { %350 = vmatpush.msra.mxu0 %v331_v12  ;;  %p757_p8 = pneg %p756_p3 }
  0x37   : > { %388 = vmatpush.msra.mxu1 %v373_v17 }
  0x38   : > { %351 = vmatpush.msra.mxu0 %v330_v14  ;;  %p762_p13 = pnand %p761_p12, %p757_p8 }
  0x39   : > { %389 = vmatpush.msra.mxu1 %v372_v19 }
  0x3a   : > { %352 = vmatpush.msra.mxu0 %v329_v16 }
  0x3b   : > { %390 = vmatpush.msra.mxu1 %v371_v21 }
  0x3c   : > { %353 = vmatpush.msra.mxu0 %v328_v18 }
  0x3d   : > { %391 = vmatpush.msra.mxu1 %v370_v23 }
  0x3e   : > { %354 = vmatpush.msra.mxu0 %v327_v20 }
  0x3f   : > { %392 = vmatpush.msra.mxu1 %v369_v25 }
  0x40   : > { %355 = vmatpush.msra.mxu0 %v326_v22 }
  0x41   : > { %393 = vmatpush.msra.mxu1 %v368_v27 }
  0x42   : > { %356 = vmatpush.msra.mxu0 %v325_v24 }
  0x43   : > { %394 = vmatpush.msra.mxu1 %v367_v30 }
  0x44   : > { %357 = vmatpush.msra.mxu0 %v324_v26 }
  0x45   : > { %395 = vmatpush.msra.mxu1 %v366_v31 }
  0x46   : > { %358 = vmatpush.msra.mxu0 %v323_v28 }
  0x47   : > { %359 = vmatmul.f32.vlgmr.msra.gmra.mxu0 %v322_v29  ;;  %396 = vmatpush.msra.mxu1 %v365_v32 }
  0xc4   : > { %v360_v34 = vpop.f32.mrf.mxu0 }
  0xc5   : > { %v361_v35 = vadd.f32 %v646_v33, %v360_v34 }
  0xc7   : > { %v363_v36 = vmax.f32 %v361_v35, 0.0 }
  0xc9   : > { %397 = vmatmul.f32.vlgmr.msra.gmra.mxu1 %v363_v36 }
 0x146   : > { %v398_v38 = vpop.f32.mrf.mxu1 }
 0x147   : > { %v411_v39 = vadd.f32 %v647_v37, %v398_v38 }
 0x149   : > { %412 = vst [vmem:[%s312_s12] sm:$0xff] %v411_v39 }
 0x14a   : > { %765 = shalt.err (!%p762_p13)
}
 0x14b   : > { %570 = dma.vmem_to_hbm [thread:$0]  (%p934_p0), %s427_s13, 128, %s429_s15, %s414_s24  }
 0x14c PF: > { %s440_s16 = sand.u32 1, %s804_s18   ;;  %p584_p2 = pnand %p548_p6, %p941_p5 }
 0x14d   : > { %s441_s8 = scalar_lea.sflag [#allocation4], %s440_s16 }
 0x14e   : > { %p585_p4 = pneg %p584_p2 }
 0x150   : > { %799 = dma.done.wait (%p585_p4), %s441_s8, 128  }
 0x151   : > { %801 = vsyncadd (%p585_p4), %s441_s8, 4294967168  ;;  %s22_s23 = sadd.s32 1, %s824_s23   ;;  %s1028_s18 = smov %s808_s19 }
 0x152   : > { %p19_p7 = scmp.ge.s32.totalorder %s22_s23, 4   ;;  %s1029_s19 = smov %s812_s20 }
 0x153   : > { %s1030_s20 = smov %s939_s28  ;;  %s1031_s21 = smov %s820_s22 }
 0x154   : > { %s1032_s22 = smov %s1034_s14  ;;  %21 = sbr.rel (!%p19_p7) target bundleno = 7 (0x7), region = 106 }
 0x159   :  { %447 = vsyncpa [#allocation3], 1 }
 0x15a   :  { %449 = vsyncpa [#allocation3 + $0x1], 1 }
 0x15b   :  { %450 = vsyncpa [#allocation6], 1 }
 0x15c   :  { %451 = vsyncpa [#allocation4], 1 }
 0x15d   :  { %453 = vsyncpa [#allocation4 + $0x1], 1 }

</bundles_post_ra>
